<compile_context>
chip_gen: v5e
topology: v5e:2x2
jax: 0.10.0
libtpu: 0.0.40
codegen_flags: <defaults>
</compile_context>

<pallas_src>
import functools

import jax
import jax.numpy as jnp
from jax import lax
from jax.experimental import pallas as pl
from jax.experimental.pallas import tpu as pltpu


TOP_K = 5


def _round_up(v, m):
    return -(-v // m) * m


# --------------------------------------------------------------------------
# Pass 1: fused forward DFT + per-row k-th largest |X|^2
# --------------------------------------------------------------------------
def _fwd_dft_topk_kernel(x_ref, wf_ref, spec_ref, kth_ref, *, top_k, f_pad):
    tile = pl.program_id(0)
    tb = x_ref.shape[0]

    x = x_ref[...]                                               # [TB, Lp] f32
    # Fused rfft: one MXU matmul -> [Re(X) | Im(X)] with f32 accumulation.
    spec = jnp.dot(x.astype(wf_ref.dtype), wf_ref[...],
                   preferred_element_type=jnp.float32)           # [TB, 2*Fp]
    spec_ref[...] = spec

    xre = spec[:, :f_pad]
    xim = spec[:, f_pad:]
    freq2 = xre * xre + xim * xim                                # |X|^2 (no sqrt)

    # freq[0] = 0  (PyTorch zeroes *batch row 0*): use the GLOBAL row index.
    grow = lax.broadcasted_iota(jnp.int32, freq2.shape, 0) + tile * tb
    freq2 = jnp.where(grow == 0, jnp.float32(0.0), freq2)

    # k-th largest per row by iterative max-extraction (duplicates counted,
    # exactly like torch.topk).  Only k-1 "remove first occurrence" steps are
    # needed; the last iteration is just a max.
    col = lax.broadcasted_iota(jnp.int32, freq2.shape, 1)
    work = freq2
    for _ in range(top_k - 1):
        m = jnp.max(work, axis=-1, keepdims=True)
        is_max = work == m
        first = jnp.min(jnp.where(is_max, col, jnp.int32(f_pad)),
                        axis=-1, keepdims=True)
        work = jnp.where(col == first, -jnp.inf, work)
    kth_ref[...] = jnp.max(work, axis=-1, keepdims=True)         # [TB, 1]


# --------------------------------------------------------------------------
# Pass 2: global-threshold mask + fused inverse DFT
# --------------------------------------------------------------------------
def _mask_inv_dft_kernel(thr_ref, x_ref, spec_ref, wi_ref,
                         season_ref, trend_ref, *, f_pad):
    tile = pl.program_id(0)
    tb = x_ref.shape[0]

    spec = spec_ref[...]                                         # [TB, 2*Fp] f32
    xre = spec[:, :f_pad]
    xim = spec[:, f_pad:]
    freq2 = xre * xre + xim * xim                                # same values as pass 1

    grow = lax.broadcasted_iota(jnp.int32, freq2.shape, 0) + tile * tb
    freq2 = jnp.where(grow == 0, jnp.float32(0.0), freq2)

    # xf[freq <= thr] = 0  (strict '>' keeps), done once on [Re | Im].
    keep = (freq2 > thr_ref[0]).astype(spec.dtype)               # [TB, Fp]
    spec_m = spec * jnp.concatenate([keep, keep], axis=-1)       # [TB, 2*Fp]

    # Fused irfft (Hermitian reconstruction baked into the weights).
    season = jnp.dot(spec_m.astype(wi_ref.dtype), wi_ref[...],
                     preferred_element_type=jnp.float32)         # [TB, Lp]

    x = x_ref[...]
    season_ref[...] = season.astype(season_ref.dtype)
    trend_ref[...] = (x - season).astype(trend_ref.dtype)


# --------------------------------------------------------------------------
# DFT weight matrices (fused + zero-padded to lane-dense shapes)
# --------------------------------------------------------------------------
def _dft_weight_matrices(L, f_pad, l_pad, dtype):
    F = L // 2 + 1
    n = jnp.arange(L, dtype=jnp.float32)[:, None]                # [L, 1]
    k = jnp.arange(F, dtype=jnp.float32)[None, :]                # [1, F]
    ang = 2.0 * jnp.pi * n * k / L                               # [L, F]
    cos_nk = jnp.cos(ang)
    sin_nk = jnp.sin(ang)
    # rfft:  Re(X) = x @ cos,  Im(X) = x @ (-sin)
    # irfft: x[n] = sum_k (w_k / L) * (Re_k cos - Im_k sin),
    #        w_0 = w_{L/2} = 1, else 2 (even L).
    ki = jnp.arange(F)
    w = jnp.where((ki == 0) | (ki == L // 2), 1.0, 2.0).astype(jnp.float32)
    ire = (w[:, None] / L) * cos_nk.T                            # [F, L]
    iim = -(w[:, None] / L) * sin_nk.T                           # [F, L]

    wf = jnp.zeros((l_pad, 2 * f_pad), jnp.float32)
    wf = wf.at[:L, :F].set(cos_nk).at[:L, f_pad:f_pad + F].set(-sin_nk)
    wi = jnp.zeros((2 * f_pad, l_pad), jnp.float32)
    wi = wi.at[:F, :L].set(ire).at[f_pad:f_pad + F, :L].set(iim)
    return wf.astype(dtype), wi.astype(dtype)


# --------------------------------------------------------------------------
# Wrapper
# --------------------------------------------------------------------------
def dft_series_decomp(x, top_k=TOP_K, *, compute_dtype=jnp.float32,
                      batch_tile=None):
    """Pallas implementation of DFT_series_decomp.forward.  x: (B, L) float.

    compute_dtype: dtype of the MXU matmul operands (float32 or bfloat16,
      the latter for the native bf16 MXU path on v6e/v7x).  Accumulation and
      all element-wise / top-k math stay float32.
    """
    x = jnp.asarray(x, jnp.float32)
    B, L = x.shape
    F = L // 2 + 1
    assert 1 <= top_k <= F, "need 1 <= top_k <= L//2 + 1"
    assert L % 2 == 0, "torch.fft.irfft default output length requires even L"

    l_pad = _round_up(L, 128)
    f_pad = _round_up(F, 128)
    tb = batch_tile if batch_tile is not None else min(128, _round_up(B, 8))
    tb = _round_up(tb, 8)
    b_pad = _round_up(B, tb)
    n_tiles = b_pad // tb

    x_p = jnp.pad(x, ((0, b_pad - B), (0, l_pad - L)))
    wf, wi = _dft_weight_matrices(L, f_pad, l_pad, compute_dtype)

    # Weight matrices are grid-invariant (index_map -> (0, 0)), so they are not
    # re-DMA'd per tile.  For very large L on v7x (64 MiB VMEM) they could also
    # be single-buffered via pipeline_mode=pl.Buffered(1).
    params = pltpu.CompilerParams(dimension_semantics=("parallel",),
                                  vmem_limit_bytes=32 * 1024 * 1024)

    # ---- pass 1: per-tile spectrum + per-row k-th largest |X|^2 ----
    spec, kth2 = pl.pallas_call(
        functools.partial(_fwd_dft_topk_kernel, top_k=top_k, f_pad=f_pad),
        grid=(n_tiles,),
        out_shape=(jax.ShapeDtypeStruct((b_pad, 2 * f_pad), jnp.float32),
                   jax.ShapeDtypeStruct((b_pad, 1), jnp.float32)),
        in_specs=[pl.BlockSpec((tb, l_pad), lambda t: (t, 0)),
                  pl.BlockSpec((l_pad, 2 * f_pad), lambda t: (0, 0))],
        out_specs=(pl.BlockSpec((tb, 2 * f_pad), lambda t: (t, 0)),
                   pl.BlockSpec((tb, 1), lambda t: (t, 0))),
        compiler_params=params,
    )(x_p, wf)

    # Global threshold: min over the REAL batch rows only (padded rows would
    # otherwise bias the min) -- tiny reduction, done in plain JAX between the
    # two passes because it needs the whole batch before any masking.
    thr2 = jnp.min(kth2[:B]).reshape(1)

    # ---- pass 2: mask + fused inverse DFT, trend = x - season ----
    season_p, trend_p = pl.pallas_call(
        functools.partial(_mask_inv_dft_kernel, f_pad=f_pad),
        grid=(n_tiles,),
        out_shape=(jax.ShapeDtypeStruct((b_pad, l_pad), jnp.float32),
                   jax.ShapeDtypeStruct((b_pad, l_pad), jnp.float32)),
        in_specs=[pl.BlockSpec(memory_space=pltpu.MemorySpace.SMEM),  # thr2 scalar
                  pl.BlockSpec((tb, l_pad), lambda t: (t, 0)),
                  pl.BlockSpec((tb, 2 * f_pad), lambda t: (t, 0)),
                  pl.BlockSpec((2 * f_pad, l_pad), lambda t: (0, 0))],
        out_specs=(pl.BlockSpec((tb, l_pad), lambda t: (t, 0)),
                   pl.BlockSpec((tb, l_pad), lambda t: (t, 0))),
        compiler_params=params,
    )(thr2, x_p, spec, wi)

    return season_p[:B, :L], trend_p[:B, :L]


# --------------------------------------------------------------------------
# Pure-JAX reference (direct transcription of the PyTorch forward)
# --------------------------------------------------------------------------
def _reference(x, top_k=TOP_K):
    x = jnp.asarray(x, jnp.float32)
    xf = jnp.fft.rfft(x)                          # dim=-1, like torch
    freq = jnp.abs(xf)
    freq = freq.at[0].set(0.0)                    # freq[0] = 0 (batch row 0)
    top_vals = jax.lax.top_k(freq, top_k)[0]      # per-row top-k, like torch.topk
    thr = jnp.min(top_vals)
    xf = jnp.where(freq <= thr, 0, xf)
    season = jnp.fft.irfft(xf)                    # length 2*(F-1) == L (even L)
    return season, x - season


if __name__ == "__main__":
    key = jax.random.PRNGKey(0)
    key_a, key_b = jax.random.split(key)

    # Small shapes consistent with the module: batch of real series, DFT over L.
    B, L = 4, 16                                  # F = 9 >= top_k = 5
    x = jax.random.normal(key_a, (B, L), dtype=jnp.float32)

    season, trend = dft_series_decomp(x, TOP_K)
    season, trend = jax.block_until_ready((season, trend))
    season_ref, trend_ref = _reference(x, TOP_K)

    assert season.shape == (B, L) and trend.shape == (B, L)
    # 1e-3 absorbs the TPU FFT accuracy of the reference; the kernel is f32.
    assert jnp.allclose(season, season_ref, atol=1e-3), "season mismatch (f32)"
    assert jnp.allclose(trend, trend_ref, atol=1e-3), "trend mismatch (f32)"
    assert jnp.allclose(season + trend, x, atol=1e-4), "decomposition not exact"

    # Multi-tile batch grid (3 tiles of 8 rows) exercises the two-pass global
    # threshold path.
    B2, L2 = 20, 32
    x2 = jax.random.normal(key_b, (B2, L2), dtype=jnp.float32)
    s2, t2 = dft_series_decomp(x2, TOP_K, batch_tile=8)
    s2, t2 = jax.block_until_ready((s2, t2))
    s2_ref, t2_ref = _reference(x2, TOP_K)
    assert jnp.allclose(s2, s2_ref, atol=1e-3), "season mismatch (tiled)"
    assert jnp.allclose(t2, t2_ref, atol=1e-3), "trend mismatch (tiled)"
    assert jnp.allclose(s2 + t2, x2, atol=1e-4), "tiled decomposition not exact"

    # bf16 MXU operand path (v6e/v7x): looser tolerance for bf16 quantization;
    # the season+trend==x identity stays exact (f32 subtraction in-kernel).
    s_bf, t_bf = dft_series_decomp(x, TOP_K, compute_dtype=jnp.bfloat16)
    s_bf, t_bf = jax.block_until_ready((s_bf, t_bf))
    assert jnp.allclose(s_bf, season_ref, atol=1.5e-1), "season mismatch (bf16)"
    assert jnp.allclose(s_bf + t_bf, x, atol=1e-4), "bf16 decomposition not exact"

    print("KERNEL_OK")
</pallas_src>

<mosaic_0001>
module attributes {stable_mosaic.version = 11 : i64} {
  func.func @_fwd_dft_topk_kernel(%arg0: i32, %arg1: memref<8x128xf32, #tpu.memory_space<vmem>>, %arg2: memref<128x256xf32, #tpu.memory_space<vmem>>, %arg3: memref<8x256xf32, #tpu.memory_space<vmem>>, %arg4: memref<8x1xf32, #tpu.memory_space<vmem>>) attributes {dimension_semantics = [#tpu.dimension_semantics<parallel>], iteration_bounds = array<i64: 1>, scalar_prefetch = 0 : i64, scratch_operands = 0 : i64, tpu.core_type = #tpu.core_type<tc>, window_params = [{transform_indices = @transform_0, window_bounds = array<i64: 8, 128>}, {pipeline_mode = #tpu.pipeline_mode<synchronous>, transform_indices = @transform_1, window_bounds = array<i64: 128, 256>}, {transform_indices = @transform_2, window_bounds = array<i64: 8, 256>}, {transform_indices = @transform_3, window_bounds = array<i64: 8, 1>}]} {
    %c0 = arith.constant 0 : index
    %c0_0 = arith.constant 0 : index
    %0 = vector.load %arg1[%c0, %c0_0] : memref<8x128xf32, #tpu.memory_space<vmem>>, vector<8x128xf32>
    %c0_1 = arith.constant 0 : index
    %c0_2 = arith.constant 0 : index
    %1 = vector.load %arg2[%c0_1, %c0_2] : memref<128x256xf32, #tpu.memory_space<vmem>>, vector<128x256xf32>
    %cst = arith.constant dense<0.000000e+00> : vector<8x256xf32>
    %2 = tpu.matmul %0, %1, %cst {dimension_numbers = #tpu.dot_dimension_numbers<[1], [0], [0], [1], [0, 0, 1, 1], [], []>} : vector<8x128xf32>, vector<128x256xf32>, vector<8x256xf32> -> vector<8x256xf32>
    %c0_3 = arith.constant 0 : index
    %c0_4 = arith.constant 0 : index
    %3 = vector.load %arg3[%c0_3, %c0_4] : memref<8x256xf32, #tpu.memory_space<vmem>>, vector<8x256xf32>
    tpu.vector_store %arg3[%c0_3, %c0_4], %2 {strides = array<i32>} : memref<8x256xf32, #tpu.memory_space<vmem>>, vector<8x256xf32>,
    %4 = vector.extract_strided_slice %2 {offsets = [0, 0], sizes = [8, 128], strides = [1, 1]} : vector<8x256xf32> to vector<8x128xf32>
    %5 = vector.extract_strided_slice %2 {offsets = [0, 128], sizes = [8, 128], strides = [1, 1]} : vector<8x256xf32> to vector<8x128xf32>
    %6 = arith.mulf %4, %4 : vector<8x128xf32>
    %7 = arith.mulf %5, %5 : vector<8x128xf32>
    %8 = arith.addf %6, %7 : vector<8x128xf32>
    %9 = tpu.iota {dimensions = array<i32: 0>} : vector<8x128xi32>
    %c8_i32 = arith.constant 8 : i32
    %10 = arith.muli %arg0, %c8_i32 : i32
    %11 = vector.broadcast %10 : i32 to vector<8x128xi32>
    %12 = arith.addi %9, %11 : vector<8x128xi32>
    %c0_i32 = arith.constant 0 : i32
    %13 = vector.broadcast %c0_i32 : i32 to vector<8x128xi32>
    %14 = arith.cmpi eq, %12, %13 : vector<8x128xi32>
    %cst_5 = arith.constant 0.000000e+00 : f32
    %15 = vector.broadcast %cst_5 : f32 to vector<8x128xf32>
    %16 = arith.select %14, %15, %8 : vector<8x128xi1>, vector<8x128xf32>
    %17 = tpu.iota {dimensions = array<i32: 1>} : vector<8x128xi32>
    %cst_6 = arith.constant dense<0xFF800000> : vector<8xf32>
    %18 = vector.multi_reduction <maximumf>, %16, %cst_6 [1] : vector<8x128xf32> to vector<8xf32>
    %19 = vector.shape_cast %18 : vector<8xf32> to vector<8x1xf32>
    %20 = vector.broadcast %19 : vector<8x1xf32> to vector<8x128xf32>
    %21 = arith.cmpf oeq, %16, %20 : vector<8x128xf32>
    %c128_i32 = arith.constant 128 : i32
    %22 = vector.broadcast %c128_i32 : i32 to vector<8x128xi32>
    %23 = arith.select %21, %17, %22 : vector<8x128xi1>, vector<8x128xi32>
    %cst_7 = arith.constant dense<2147483647> : vector<8xi32>
    %24 = vector.multi_reduction <minsi>, %23, %cst_7 [1] : vector<8x128xi32> to vector<8xi32>
    %25 = vector.shape_cast %24 : vector<8xi32> to vector<8x1xi32>
    %26 = vector.broadcast %25 : vector<8x1xi32> to vector<8x128xi32>
    %27 = arith.cmpi eq, %17, %26 : vector<8x128xi32>
    %cst_8 = arith.constant 0xFF800000 : f32
    %28 = vector.broadcast %cst_8 : f32 to vector<8x128xf32>
    %29 = arith.select %27, %28, %16 : vector<8x128xi1>, vector<8x128xf32>
    %cst_9 = arith.constant dense<0xFF800000> : vector<8xf32>
    %30 = vector.multi_reduction <maximumf>, %29, %cst_9 [1] : vector<8x128xf32> to vector<8xf32>
    %31 = vector.shape_cast %30 : vector<8xf32> to vector<8x1xf32>
    %32 = vector.broadcast %31 : vector<8x1xf32> to vector<8x128xf32>
    %33 = arith.cmpf oeq, %29, %32 : vector<8x128xf32>
    %c128_i32_10 = arith.constant 128 : i32
    %34 = vector.broadcast %c128_i32_10 : i32 to vector<8x128xi32>
    %35 = arith.select %33, %17, %34 : vector<8x128xi1>, vector<8x128xi32>
    %cst_11 = arith.constant dense<2147483647> : vector<8xi32>
    %36 = vector.multi_reduction <minsi>, %35, %cst_11 [1] : vector<8x128xi32> to vector<8xi32>
    %37 = vector.shape_cast %36 : vector<8xi32> to vector<8x1xi32>
    %38 = vector.broadcast %37 : vector<8x1xi32> to vector<8x128xi32>
    %39 = arith.cmpi eq, %17, %38 : vector<8x128xi32>
    %cst_12 = arith.constant 0xFF800000 : f32
    %40 = vector.broadcast %cst_12 : f32 to vector<8x128xf32>
    %41 = arith.select %39, %40, %29 : vector<8x128xi1>, vector<8x128xf32>
    %cst_13 = arith.constant dense<0xFF800000> : vector<8xf32>
    %42 = vector.multi_reduction <maximumf>, %41, %cst_13 [1] : vector<8x128xf32> to vector<8xf32>
    %43 = vector.shape_cast %42 : vector<8xf32> to vector<8x1xf32>
    %44 = vector.broadcast %43 : vector<8x1xf32> to vector<8x128xf32>
    %45 = arith.cmpf oeq, %41, %44 : vector<8x128xf32>
    %c128_i32_14 = arith.constant 128 : i32
    %46 = vector.broadcast %c128_i32_14 : i32 to vector<8x128xi32>
    %47 = arith.select %45, %17, %46 : vector<8x128xi1>, vector<8x128xi32>
    %cst_15 = arith.constant dense<2147483647> : vector<8xi32>
    %48 = vector.multi_reduction <minsi>, %47, %cst_15 [1] : vector<8x128xi32> to vector<8xi32>
    %49 = vector.shape_cast %48 : vector<8xi32> to vector<8x1xi32>
    %50 = vector.broadcast %49 : vector<8x1xi32> to vector<8x128xi32>
    %51 = arith.cmpi eq, %17, %50 : vector<8x128xi32>
    %cst_16 = arith.constant 0xFF800000 : f32
    %52 = vector.broadcast %cst_16 : f32 to vector<8x128xf32>
    %53 = arith.select %51, %52, %41 : vector<8x128xi1>, vector<8x128xf32>
    %cst_17 = arith.constant dense<0xFF800000> : vector<8xf32>
    %54 = vector.multi_reduction <maximumf>, %53, %cst_17 [1] : vector<8x128xf32> to vector<8xf32>
    %55 = vector.shape_cast %54 : vector<8xf32> to vector<8x1xf32>
    %56 = vector.broadcast %55 : vector<8x1xf32> to vector<8x128xf32>
    %57 = arith.cmpf oeq, %53, %56 : vector<8x128xf32>
    %c128_i32_18 = arith.constant 128 : i32
    %58 = vector.broadcast %c128_i32_18 : i32 to vector<8x128xi32>
    %59 = arith.select %57, %17, %58 : vector<8x128xi1>, vector<8x128xi32>
    %cst_19 = arith.constant dense<2147483647> : vector<8xi32>
    %60 = vector.multi_reduction <minsi>, %59, %cst_19 [1] : vector<8x128xi32> to vector<8xi32>
    %61 = vector.shape_cast %60 : vector<8xi32> to vector<8x1xi32>
    %62 = vector.broadcast %61 : vector<8x1xi32> to vector<8x128xi32>
    %63 = arith.cmpi eq, %17, %62 : vector<8x128xi32>
    %cst_20 = arith.constant 0xFF800000 : f32
    %64 = vector.broadcast %cst_20 : f32 to vector<8x128xf32>
    %65 = arith.select %63, %64, %53 : vector<8x128xi1>, vector<8x128xf32>
    %cst_21 = arith.constant dense<0xFF800000> : vector<8xf32>
    %66 = vector.multi_reduction <maximumf>, %65, %cst_21 [1] : vector<8x128xf32> to vector<8xf32>
    %67 = vector.shape_cast %66 : vector<8xf32> to vector<8x1xf32>
    %c0_22 = arith.constant 0 : index
    %c0_23 = arith.constant 0 : index
    %68 = vector.load %arg4[%c0_22, %c0_23] : memref<8x1xf32, #tpu.memory_space<vmem>>, vector<8x1xf32>
    tpu.vector_store %arg4[%c0_22, %c0_23], %67 {strides = array<i32>} : memref<8x1xf32, #tpu.memory_space<vmem>>, vector<8x1xf32>,
    return
  }
  func.func @transform_0(%arg0: i32) -> (i32, i32) {
    %c0_i32 = arith.constant 0 : i32
    %c0_i32_0 = arith.constant 0 : i32
    return %arg0, %c0_i32 : i32, i32
  }
  func.func @transform_1(%arg0: i32) -> (i32, i32) {
    %c0_i32 = arith.constant 0 : i32
    %c0_i32_0 = arith.constant 0 : i32
    %c0_i32_1 = arith.constant 0 : i32
    return %c0_i32, %c0_i32_0 : i32, i32
  }
  func.func @transform_2(%arg0: i32) -> (i32, i32) {
    %c0_i32 = arith.constant 0 : i32
    %c0_i32_0 = arith.constant 0 : i32
    return %arg0, %c0_i32 : i32, i32
  }
  func.func @transform_3(%arg0: i32) -> (i32, i32) {
    %c0_i32 = arith.constant 0 : i32
    %c0_i32_0 = arith.constant 0 : i32
    return %arg0, %c0_i32 : i32, i32
  }
}

</mosaic_0001>

<bundles_post_ra>
// kernel: tpu_custom_call.1
= control target key start
LH: loop header
LB: loop body
LE: loop exit
PB: predicated region body
PF: predicated region fallthrough
CT: control target
= control target key end

     0   :  { %9 = vsyncpa [#allocation3], 0  ;;  %s367_s0 = inlined_call_operand.hbm [shape: f32[8,128], index: 0, kind: input, shape index: {}]   ;;  %s368_s1 = inlined_call_operand.hbm [shape: f32[128,256], index: 1, kind: input, shape index: {}]   ;;  %s369_s2 = inlined_call_operand.hbm [shape: f32[8,256], index: 2, kind: output, shape index: {0}]   ;;  %s370_s3 = inlined_call_operand.vmem [shape: f32[8,1], index: 3, kind: output, shape index: {1}]  }
   0x1   :  { %10 = vsyncpa [#allocation6], 0 }
   0x2   :  { %11 = vsyncpa [#allocation4], 0  ;;  %s17_s14 = sshll.u32 %s367_s0, 4  ;;  %s320_s15 = smov [#allocation2]   ;;  %s18_s14 = int_to_ptr.hbm [resolvable:$true] %s17_s14 }
   0x3   :  { %s19_s16 = sshll.u32 %s320_s15, 4  ;;  %s27_s19 = sshll.u32 %s368_s1, 4  ;;  %s20_s16 = int_to_ptr.vmem [resolvable:$true] %s19_s16  ;;  %s28_s19 = int_to_ptr.hbm [resolvable:$true] %s27_s19 }
   0x4   :  { %22 = dma.hbm_to_vmem [thread:$0]  %s18_s14, 128, %s20_s16, [#allocation3]  }
   0x5   :  { %s321_s20 = smov [#allocation5]   ;;  %s322_s22 = smov 256  }
   0x6   :  { %s29_s21 = sshll.u32 %s321_s20, 4  ;;  %s323_s23 = smov 16   ;;  %s30_s21 = int_to_ptr.vmem [resolvable:$true] %s29_s21 }
   0x7   :  { %35 = dma.hbm_to_vmem [thread:$0]  %s28_s19, 4096, %s30_s21, [#allocation6], %s322_s22, %s322_s22, %s323_s23  }
   0x8   :  { %314 = dma.done.wait [#allocation3], 128  }
   0x9   :  { %315 = vsyncadd [#allocation3], 4294967168 }
   0xa   :  { %316 = dma.done.wait [#allocation6], 4096  }
   0xb   :  { %317 = vsyncadd [#allocation6], 4294963200  ;;  %v75_v0 = vld [vmem:[#allocation5 + $0xf0] sm:$0xff]  ;;  %v76_v1 = vld [vmem:[#allocation5 + $0xf8] sm:$0xff]  ;;  %v122_v33 = vlaneseq  ;;  %s324_s0 = smov [#allocation7]   ;;  %s222_s26 = sshll.u32 %s369_s2, 4  ;;  %s223_s26 = int_to_ptr.hbm [resolvable:$true] %s222_s26 }
   0xc   :  { %v73_v2 = vld [vmem:[#allocation5 + $0xe0] sm:$0xff]  ;;  %77 = vmatpush.msra.mxu0 %v75_v0  ;;  %97 = vmatpush.msra.mxu1 %v76_v1  ;;  %v74_v3 = vld [vmem:[#allocation5 + $0xe8] sm:$0xff]  ;;  %v71_v4 = vld [vmem:[#allocation5 + $0xd0] sm:$0xff]  ;;  %s220_s1 = sshll.u32 %s324_s0, 4  ;;  %vm213_vm13 = vcmask 7168   ;;  %s221_s1 = int_to_ptr.vmem [resolvable:$true] %s220_s1 }
   0xd   :  { %v72_v5 = vld [vmem:[#allocation5 + $0xd8] sm:$0xff]  ;;  %v69_v6 = vld [vmem:[#allocation5 + $0xc0] sm:$0xff]  ;;  %v70_v7 = vld [vmem:[#allocation5 + $0xc8] sm:$0xff]  ;;  %v123_v34 = vshrl.u32 %v122_v33, 7  ;;  %v351_v41 = vand.u32 127, %v122_v33 }
   0xe   :  { %78 = vmatpush.msra.mxu0 %v73_v2  ;;  %98 = vmatpush.msra.mxu1 %v74_v3  ;;  %v67_v8 = vld [vmem:[#allocation5 + $0xb0] sm:$0xff]  ;;  %v68_v9 = vld [vmem:[#allocation5 + $0xb8] sm:$0xff]  ;;  %v65_v10 = vld [vmem:[#allocation5 + $0xa0] sm:$0xff] }
   0xf   :  { %v66_v11 = vld [vmem:[#allocation5 + $0xa8] sm:$0xff]  ;;  %v63_v12 = vld [vmem:[#allocation5 + $0x90] sm:$0xff]  ;;  %v64_v13 = vld [vmem:[#allocation5 + $0x98] sm:$0xff]  ;;  %vm127_vm0 = vcmp.eq.s32.totalorder %v123_v34, 0 }
  0x10   :  { %79 = vmatpush.msra.mxu0 %v71_v4  ;;  %99 = vmatpush.msra.mxu1 %v72_v5  ;;  %v61_v14 = vld [vmem:[#allocation5 + $0x80] sm:$0xff]  ;;  %v62_v15 = vld [vmem:[#allocation5 + $0x88] sm:$0xff]  ;;  %v59_v16 = vld [vmem:[#allocation5 + $0x70] sm:$0xff] }
  0x11   :  { %v60_v17 = vld [vmem:[#allocation5 + $0x78] sm:$0xff]  ;;  %v57_v18 = vld [vmem:[#allocation5 + $0x60] sm:$0xff]  ;;  %v58_v19 = vld [vmem:[#allocation5 + $0x68] sm:$0xff] }
  0x12   :  { %80 = vmatpush.msra.mxu0 %v69_v6  ;;  %100 = vmatpush.msra.mxu1 %v70_v7  ;;  %v55_v20 = vld [vmem:[#allocation5 + $0x50] sm:$0xff]  ;;  %v56_v21 = vld [vmem:[#allocation5 + $0x58] sm:$0xff]  ;;  %v53_v22 = vld [vmem:[#allocation5 + $0x40] sm:$0xff] }
  0x13   :  { %v54_v23 = vld [vmem:[#allocation5 + $0x48] sm:$0xff]  ;;  %v51_v24 = vld [vmem:[#allocation5 + $0x30] sm:$0xff]  ;;  %v52_v25 = vld [vmem:[#allocation5 + $0x38] sm:$0xff] }
  0x14   :  { %81 = vmatpush.msra.mxu0 %v67_v8  ;;  %101 = vmatpush.msra.mxu1 %v68_v9  ;;  %v49_v26 = vld [vmem:[#allocation5 + $0x20] sm:$0xff]  ;;  %v50_v27 = vld [vmem:[#allocation5 + $0x28] sm:$0xff]  ;;  %v47_v28 = vld [vmem:[#allocation5 + $0x10] sm:$0xff] }
  0x15   :  { %v48_v29 = vld [vmem:[#allocation5 + $0x18] sm:$0xff]  ;;  %v45_v30 = vld [vmem:[#allocation5] sm:$0xff]  ;;  %v46_v31 = vld [vmem:[#allocation5 + $0x8] sm:$0xff] }
  0x16   :  { %82 = vmatpush.msra.mxu0 %v65_v10  ;;  %102 = vmatpush.msra.mxu1 %v66_v11  ;;  %v44_v32 = vld [vmem:[#allocation2] sm:$0xff] }
  0x18   :  { %83 = vmatpush.msra.mxu0 %v63_v12  ;;  %103 = vmatpush.msra.mxu1 %v64_v13 }
  0x1a   :  { %84 = vmatpush.msra.mxu0 %v61_v14  ;;  %104 = vmatpush.msra.mxu1 %v62_v15 }
  0x1c   :  { %85 = vmatpush.msra.mxu0 %v59_v16  ;;  %105 = vmatpush.msra.mxu1 %v60_v17 }
  0x1e   :  { %86 = vmatpush.msra.mxu0 %v57_v18  ;;  %106 = vmatpush.msra.mxu1 %v58_v19 }
  0x20   :  { %87 = vmatpush.msra.mxu0 %v55_v20  ;;  %107 = vmatpush.msra.mxu1 %v56_v21 }
  0x22   :  { %88 = vmatpush.msra.mxu0 %v53_v22  ;;  %108 = vmatpush.msra.mxu1 %v54_v23 }
  0x24   :  { %89 = vmatpush.msra.mxu0 %v51_v24  ;;  %109 = vmatpush.msra.mxu1 %v52_v25 }
  0x26   :  { %90 = vmatpush.msra.mxu0 %v49_v26  ;;  %110 = vmatpush.msra.mxu1 %v50_v27 }
  0x28   :  { %91 = vmatpush.msra.mxu0 %v47_v28  ;;  %111 = vmatpush.msra.mxu1 %v48_v29 }
  0x2a   :  { %92 = vmatpush.msra.mxu0 %v45_v30  ;;  %112 = vmatpush.msra.mxu1 %v46_v31 }
  0x2b   :  { %93 = vmatmul.f32.vlgmr.msra.gmra.mxu0 %v44_v32  ;;  %113 = vmatmul.f32.vlgmr.msra.gmra.mxu1 %v44_v32 }
  0xa8   :  { %v94_v35 = vpop.f32.mrf.mxu0  ;;  %v114_v36 = vpop.f32.mrf.mxu1 }
  0xa9   :  { %117 = vst [vmem:[#allocation7] sm:$0xff] %v94_v35  ;;  %v119_v37 = vmul.f32 %v94_v35, %v94_v35  ;;  %v120_v38 = vmul.f32 %v114_v36, %v114_v36 }
  0xaa   :  { %118 = vst [vmem:[#allocation7 + $0x8] sm:$0xff] %v114_v36 }
  0xab   :  { %v121_v39 = vadd.f32 %v120_v38, %v119_v37  ;;  %225 = dma.vmem_to_hbm [thread:$0]  %s221_s1, 256, %s223_s26, [#allocation4]  }
  0xad   :  { %v128_v40 = vsel %vm127_vm0, 0.0, %v121_v39 }
  0xae   :  { %131 = vmax.xlane.f32.xlu0 %v128_v40 }
 0x121   :  { %v132_v42 = vpop.xlane.xlu0 %131 }
 0x122   :  { %vm133_vm1 = vcmp.eq.f32.partialorder %v128_v40, %v132_v42 }
 0x123   :  { %v134_v43 = vsel %vm133_vm1, %v351_v41, 128 }
 0x124   :  { %v136_v44 = vshra.s32 %v134_v43, 16  ;;  %v135_v46 = vand.u32 65535, %v134_v43 }
 0x126   :  { %v138_v45 = vcvt.s32.f32 %v136_v44  ;;  %v137_v48 = vcvt.s32.f32 %v135_v46 }
 0x128   :  { %139 = vmin.xlane.f32.xlu0 %v138_v45 }
 0x19b   :  { %v140_v47 = vpop.xlane.xlu0 %139 }
 0x19c   :  { %vm141_vm2 = vcmp.eq.f32.partialorder %v138_v45, %v140_v47  ;;  %v146_v50 = vcvt.f32.s32 %v140_v47 }
 0x19d   :  { %v142_v49 = vsel %vm141_vm2, %v137_v48, inf }
 0x19e   :  { %143 = vmin.xlane.f32.xlu1 %v142_v49  ;;  %v147_v52 = vshll.u32 %v146_v50, 16 }
 0x211   :  { %v144_v51 = vpop.xlane.xlu1 %143 }
 0x212   :  { %v145_v53 = vcvt.f32.s32 %v144_v51 }
 0x214   :  { %v148_v54 = vadd.s32 %v147_v52, %v145_v53 }
 0x216   :  { %vm149_vm3 = vcmp.eq.s32.totalorder %v351_v41, %v148_v54 }
 0x217   :  { %v150_v55 = vsel %vm149_vm3, -inf, %v128_v40 }
 0x218   :  { %151 = vmax.xlane.f32.xlu1 %v150_v55 }
 0x28b   :  { %v152_v56 = vpop.xlane.xlu1 %151 }
 0x28c   :  { %vm153_vm4 = vcmp.eq.f32.partialorder %v150_v55, %v152_v56 }
 0x28d   :  { %v154_v57 = vsel %vm153_vm4, %v351_v41, 128 }
 0x28e   :  { %v156_v58 = vshra.s32 %v154_v57, 16  ;;  %v155_v60 = vand.u32 65535, %v154_v57 }
 0x290   :  { %v158_v59 = vcvt.s32.f32 %v156_v58  ;;  %v157_v62 = vcvt.s32.f32 %v155_v60 }
 0x292   :  { %159 = vmin.xlane.f32.xlu2 %v158_v59 }
 0x305   :  { %v160_v61 = vpop.xlane.xlu2 %159 }
 0x306   :  { %vm161_vm5 = vcmp.eq.f32.partialorder %v158_v59, %v160_v61  ;;  %v166_v0 = vcvt.f32.s32 %v160_v61 }
 0x307   :  { %v162_v63 = vsel %vm161_vm5, %v157_v62, inf }
 0x308   :  { %163 = vmin.xlane.f32.xlu2 %v162_v63  ;;  %v167_v2 = vshll.u32 %v166_v0, 16 }
 0x37b   :  { %v164_v1 = vpop.xlane.xlu2 %163 }
 0x37c   :  { %v165_v3 = vcvt.f32.s32 %v164_v1 }
 0x37e   :  { %v168_v4 = vadd.s32 %v167_v2, %v165_v3 }
 0x380   :  { %vm169_vm6 = vcmp.eq.s32.totalorder %v351_v41, %v168_v4 }
 0x381   :  { %v170_v5 = vsel %vm169_vm6, -inf, %v150_v55 }
 0x382   :  { %171 = vmax.xlane.f32.xlu0 %v170_v5 }
 0x3f5   :  { %v172_v6 = vpop.xlane.xlu0 %171 }
 0x3f6   :  { %vm173_vm7 = vcmp.eq.f32.partialorder %v170_v5, %v172_v6 }
 0x3f7   :  { %v174_v7 = vsel %vm173_vm7, %v351_v41, 128 }
 0x3f8   :  { %v176_v8 = vshra.s32 %v174_v7, 16  ;;  %v175_v10 = vand.u32 65535, %v174_v7 }
 0x3fa   :  { %v178_v9 = vcvt.s32.f32 %v176_v8  ;;  %v177_v12 = vcvt.s32.f32 %v175_v10 }
 0x3fc   :  { %179 = vmin.xlane.f32.xlu1 %v178_v9 }
 0x46f   :  { %v180_v11 = vpop.xlane.xlu1 %179 }
 0x470   :  { %vm181_vm8 = vcmp.eq.f32.partialorder %v178_v9, %v180_v11  ;;  %v186_v14 = vcvt.f32.s32 %v180_v11 }
 0x471   :  { %v182_v13 = vsel %vm181_vm8, %v177_v12, inf }
 0x472   :  { %183 = vmin.xlane.f32.xlu2 %v182_v13  ;;  %v187_v16 = vshll.u32 %v186_v14, 16 }
 0x4e5   :  { %v184_v15 = vpop.xlane.xlu2 %183 }
 0x4e6   :  { %v185_v17 = vcvt.f32.s32 %v184_v15 }
 0x4e8   :  { %v188_v18 = vadd.s32 %v187_v16, %v185_v17 }
 0x4ea   :  { %vm189_vm9 = vcmp.eq.s32.totalorder %v351_v41, %v188_v18 }
 0x4eb   :  { %v190_v19 = vsel %vm189_vm9, -inf, %v170_v5 }
 0x4ec   :  { %191 = vmax.xlane.f32.xlu0 %v190_v19 }
 0x55f   :  { %v192_v20 = vpop.xlane.xlu0 %191 }
 0x560   :  { %vm193_vm10 = vcmp.eq.f32.partialorder %v190_v19, %v192_v20 }
 0x561   :  { %v194_v21 = vsel %vm193_vm10, %v351_v41, 128 }
 0x562   :  { %v196_v22 = vshra.s32 %v194_v21, 16  ;;  %v195_v24 = vand.u32 65535, %v194_v21 }
 0x564   :  { %v198_v23 = vcvt.s32.f32 %v196_v22  ;;  %v197_v26 = vcvt.s32.f32 %v195_v24 }
 0x566   :  { %199 = vmin.xlane.f32.xlu1 %v198_v23 }
 0x5d9   :  { %v200_v25 = vpop.xlane.xlu1 %199 }
 0x5da   :  { %vm201_vm11 = vcmp.eq.f32.partialorder %v198_v23, %v200_v25  ;;  %v206_v28 = vcvt.f32.s32 %v200_v25 }
 0x5db   :  { %v202_v27 = vsel %vm201_vm11, %v197_v26, inf }
 0x5dc   :  { %203 = vmin.xlane.f32.xlu2 %v202_v27  ;;  %v207_v30 = vshll.u32 %v206_v28, 16 }
 0x64f   :  { %v204_v29 = vpop.xlane.xlu2 %203 }
 0x650   :  { %v205_v31 = vcvt.f32.s32 %v204_v29 }
 0x652   :  { %v208_v32 = vadd.s32 %v207_v30, %v205_v31 }
 0x654   :  { %vm209_vm12 = vcmp.eq.s32.totalorder %v351_v41, %v208_v32 }
 0x655   :  { %v210_v33 = vsel %vm209_vm12, -inf, %v190_v19 }
 0x656   :  { %211 = vmax.xlane.f32.xlu0 %v210_v33 }
 0x6c9   :  { %v212_v34 = vpop.xlane.xlu0 %211 }
 0x6ca   :  { %214 = vst.msk [vmem:[%s370_s3] sm:$0xff] %vm213_vm13, %v212_v34 }
 0x6cb   :  { %318 = dma.done.wait [#allocation4], 256  }
 0x6cc   :  { %319 = vsyncadd [#allocation4], 4294967040 }
 0x6cd   :  { %234 = vsyncpa [#allocation3], 1 }
 0x6ce   :  { %235 = vsyncpa [#allocation6], 1 }
 0x6cf   :  { %236 = vsyncpa [#allocation4], 1 }

</bundles_post_ra>
